<compile_context>
chip_gen: v5e
topology: v5e:2x2
jax: 0.10.0
libtpu: 0.0.40
codegen_flags: <defaults>
</compile_context>

<pallas_src>
import numpy as np
import jax
import jax.numpy as jnp
from jax.experimental import pallas as pl
from jax.experimental.pallas import tpu as pltpu


# ----------------------------------------------------------------------------
# host-side constant matrices (numpy, exact)
# ----------------------------------------------------------------------------
def _bilinear_matrix(n_out, n_in):
    """1-D bilinear-resize matrix, align_corners=True (PyTorch semantics)."""
    A = np.zeros((n_out, n_in), dtype=np.float32)
    if n_out == 1 or n_in == 1:
        A[:, 0] = 1.0
        return A
    scale = (n_in - 1) / (n_out - 1)
    for i in range(n_out):
        s = i * scale
        i0 = min(int(np.floor(s)), n_in - 1)
        i1 = min(i0 + 1, n_in - 1)
        f = s - i0
        A[i, i0] += 1.0 - f
        A[i, i1] += f
    return A


def _shift_cols(M, d):
    """M'[:, q] = M[:, q + d] (zero when out of range)."""
    out = np.zeros_like(M)
    n = M.shape[1]
    for q in range(n):
        if 0 <= q + d < n:
            out[:, q] = M[:, q + d]
    return out


def _shift_rows(M, d):
    """M'[p, :] = M[p + d, :] (zero when out of range)."""
    out = np.zeros_like(M)
    n = M.shape[0]
    for p in range(n):
        if 0 <= p + d < n:
            out[p, :] = M[p + d, :]
    return out


def _pick_tc(F_l, W, W2, max_lanes=512):
    """Output-channel tile size.

    Prefer a single tile (nT == 1) when the whole-channel lane width stays
    under `max_lanes` (every block then equals the full array dims).
    Otherwise pick the largest divisor whose g- and x-lane widths are both
    128-aligned and under the cap (lane-dense blocks, bounded per-step VMEM,
    portable to v7x's 64 MiB VMEM)."""
    if F_l * W2 <= max_lanes:
        return F_l
    best = None
    for tc in range(1, F_l):
        if (F_l % tc == 0 and (tc * W2) % 128 == 0 and (tc * W) % 128 == 0
                and tc * W2 <= max_lanes):
            best = tc
    return best if best is not None else F_l


# ----------------------------------------------------------------------------
# Pallas kernel + wrapper
# ----------------------------------------------------------------------------
def attention_block_groups(g, x, w1, b1, w2, b2, bn_scale, bn_shift,
                           tile_c=None, operand_dtype=jnp.float32):
    """g: (B, F_g, H, W), x: (B, F_l, 2H, 2W); returns sigmoid(W_g(g)) * x."""
    B, F_g, H, W = g.shape
    Bx, F_l, H2, W2 = x.shape
    assert Bx == B and H2 == 2 * H and W2 == 2 * W
    assert F_g % F_l == 0, "groups=F_l requires F_g divisible by F_l"
    gs = F_g // F_l                      # input channels per group

    Tc = tile_c if tile_c is not None else _pick_tc(F_l, W, W2)
    assert F_l % Tc == 0
    nT = F_l // Tc                       # output-channel tiles
    L = Tc * W2                          # lane width of working slabs
    Lg = Tc * W                          # lane width of the g slab
    if nT > 1:
        assert L % 128 == 0 and Lg % 128 == 0, (
            "channel tiling requires 128-aligned lane blocks; pass tile_c=F_l")

    # ---- constants: bilinear resize with conv1 tap shifts folded + batched ----
    A_h = _bilinear_matrix(H2, H)                      # (H2, H)
    A_wT = _bilinear_matrix(W2, W).T                   # (W, W2)
    eyeT = np.eye(Tc, dtype=np.float32)
    # width resize + kw tap shift, block-diagonal over the Tc lane channels;
    # all 3 kw taps side by side -> one (Lg, 3*L) MXU operand.
    aw_all = np.concatenate(
        [np.kron(eyeT, _shift_cols(A_wT, kw - 1)) for kw in range(3)], axis=1)
    # height resize + kh tap shift, tiled over the gs in-channels per group;
    # all 3 kh taps side by side -> one (H2, 3*gs*H) MXU operand (K = 3*gs*H).
    ah_all = np.concatenate(
        [np.tile(_shift_rows(A_h, kh - 1), (1, gs)) for kh in range(3)], axis=1)

    # ---- relayout inputs: channels packed into lanes, tiled over out-channels ----
    # NOTE: end-to-end this op is memory bound; if the producer/consumer can use
    # the (B, nT, H2, Tc*W2) lane-packed layout directly these transposes vanish.
    g_t = (g.reshape(B, nT, Tc, gs, H, W)
             .transpose(0, 1, 3, 4, 2, 5)
             .reshape(B, nT, gs * H, Lg)).astype(operand_dtype)
    x_t = (x.reshape(B, nT, Tc, H2, W2)
             .transpose(0, 1, 3, 2, 4)
             .reshape(B, nT, H2, L))

    # ---- per-channel params expanded along lanes (c-major, w-minor) ----
    def lane_expand(v):                                   # (..., F_l) -> (..., F_l*W2)
        return jnp.repeat(v, W2, axis=-1)

    # conv1 weights expanded to a (3, 3, gs*H, F_l*W2) slab so the per-(kh,kw)
    # scaling of up_w is a single full-slab VPU multiply.
    w1_slab = jnp.repeat(jnp.repeat(jnp.transpose(w1, (2, 3, 1, 0)), H, axis=2),
                         W2, axis=3).astype(jnp.float32)          # (3,3,gs*H,F_l*W2)
    # conv2 weights with BatchNorm scale folded in.
    w2_lanes = lane_expand(jnp.transpose(w2[:, 0], (1, 2, 0))
                           * bn_scale[None, None, :]).astype(jnp.float32)  # (3,3,F_l*W2)
    # rows: [conv1 bias, b2*scale + shift (everything after the conv2 taps)]
    params = lane_expand(jnp.stack([b1, b2 * bn_scale + bn_shift])
                         ).astype(jnp.float32)                     # (2, F_l*W2)

    aw_all = jnp.asarray(aw_all, dtype=operand_dtype)
    ah_all = jnp.asarray(ah_all, dtype=operand_dtype)

    def kernel(g_ref, x_ref, aw_ref, ah_ref, w1_ref, w2_ref, par_ref, out_ref):
        g2 = g_ref[0, 0]                                          # (gs*H, Lg)

        # ---- x2 bilinear width resize, all 3 kw tap shifts in ONE matmul ----
        up_w = jnp.dot(g2, aw_ref[...],
                       preferred_element_type=jnp.float32)        # (gs*H, 3*L)

        # ---- conv1 tap weights on the VPU; height resize + j/kh sum on MXU ----
        right = jnp.concatenate(
            [w1_ref[kh, 0] * up_w[:, 0 * L:1 * L]
             + w1_ref[kh, 1] * up_w[:, 1 * L:2 * L]
             + w1_ref[kh, 2] * up_w[:, 2 * L:3 * L]
             for kh in range(3)], axis=0)                         # (3*gs*H, L)
        y1 = jnp.dot(ah_ref[...], right.astype(ah_ref.dtype),
                     preferred_element_type=jnp.float32)          # (H2, L)
        y1 = y1 + par_ref[0:1, :]                                 # conv1 bias

        # ---- depthwise conv2: +-1 shifts on the XLU, boundary lanes masked ----
        row = jax.lax.broadcasted_iota(jnp.int32, (H2, L), 0)
        col = jax.lax.broadcasted_iota(jnp.int32, (H2, L), 1) % W2
        top, bot = row > 0, row < H2 - 1
        lft, rgt = col > 0, col < W2 - 1

        acc2 = jnp.zeros((H2, L), jnp.float32) + par_ref[1:2, :]  # b2*scale + shift
        for kh in range(3):
            if kh == 0:
                base = jnp.where(top, pltpu.roll(y1, shift=1, axis=0), 0.0)
            elif kh == 2:
                base = jnp.where(bot, pltpu.roll(y1, shift=H2 - 1, axis=0), 0.0)
            else:
                base = y1
            for kw in range(3):
                if kw == 0:
                    tap = jnp.where(lft, pltpu.roll(base, shift=1, axis=1), 0.0)
                elif kw == 2:
                    tap = jnp.where(rgt, pltpu.roll(base, shift=L - 1, axis=1), 0.0)
                else:
                    tap = base
                acc2 = acc2 + w2_ref[kh, kw:kw + 1, :] * tap

        # ---- BatchNorm already folded; sigmoid + gate; lane-dense store ----
        out_ref[0, 0, :, :] = (jax.nn.sigmoid(acc2) * x_ref[0, 0]).astype(out_ref.dtype)

    grid_spec = pltpu.PrefetchScalarGridSpec(
        num_scalar_prefetch=0,
        grid=(B, nT),
        in_specs=[
            pl.BlockSpec((1, 1, gs * H, Lg), lambda b, t: (b, t, 0, 0)),    # g
            pl.BlockSpec((1, 1, H2, L), lambda b, t: (b, t, 0, 0)),         # x
            pl.BlockSpec((Lg, 3 * L), lambda b, t: (0, 0)),                 # aw_all
            pl.BlockSpec((H2, 3 * gs * H), lambda b, t: (0, 0)),            # ah_all
            pl.BlockSpec((3, 3, gs * H, L), lambda b, t: (0, 0, 0, t)),     # w1_slab
            pl.BlockSpec((3, 3, L), lambda b, t: (0, 0, t)),                # w2_lanes
            pl.BlockSpec((2, L), lambda b, t: (0, t)),                      # b1 / folded shift
        ],
        out_specs=pl.BlockSpec((1, 1, H2, L), lambda b, t: (b, t, 0, 0)),
    )

    out_t = pl.pallas_call(
        kernel,
        out_shape=jax.ShapeDtypeStruct((B, nT, H2, L), x.dtype),
        grid_spec=grid_spec,
        compiler_params=pltpu.CompilerParams(
            dimension_semantics=("parallel", "parallel"),
            # per-step VMEM is small with the capped lane width; on v5e/v6e this
            # can be raised (with a larger max_lanes) to amortize step overhead.
            vmem_limit_bytes=32 * 1024 * 1024,
        ),
    )(g_t, x_t, aw_all, ah_all, w1_slab, w2_lanes, params)

    # back to NCHW
    out = (out_t.reshape(B, nT, H2, Tc, W2)
                .transpose(0, 1, 3, 2, 4)
                .reshape(B, F_l, H2, W2))
    return out


# ----------------------------------------------------------------------------
# self-test
# ----------------------------------------------------------------------------
if __name__ == "__main__":
    B, F_g, F_l, H, W = 2, 16, 8, 8, 8
    H2, W2 = 2 * H, 2 * W
    gs = F_g // F_l
    eps = 1e-5

    key = jax.random.PRNGKey(0)
    ks = jax.random.split(key, 10)
    g = jax.random.normal(ks[0], (B, F_g, H, W), jnp.float32)
    x = jax.random.normal(ks[1], (B, F_l, H2, W2), jnp.float32)
    w1 = 0.2 * jax.random.normal(ks[2], (F_l, gs, 3, 3), jnp.float32)   # grouped conv
    b1 = 0.1 * jax.random.normal(ks[3], (F_l,), jnp.float32)
    w2 = 0.2 * jax.random.normal(ks[4], (F_l, 1, 3, 3), jnp.float32)    # depthwise conv
    b2 = 0.1 * jax.random.normal(ks[5], (F_l,), jnp.float32)
    gamma = 1.0 + 0.1 * jax.random.normal(ks[6], (F_l,), jnp.float32)
    beta = 0.1 * jax.random.normal(ks[7], (F_l,), jnp.float32)
    rmean = 0.1 * jax.random.normal(ks[8], (F_l,), jnp.float32)
    rvar = jnp.abs(jax.random.normal(ks[9], (F_l,), jnp.float32)) + 0.5

    # BatchNorm2d (inference): fold running stats + affine into scale/shift.
    bn_scale = gamma / jnp.sqrt(rvar + eps)
    bn_shift = beta - rmean * bn_scale

    out = attention_block_groups(g, x, w1, b1, w2, b2, bn_scale, bn_shift)
    out = jax.block_until_ready(out)

    # ---- pure-JAX reference (HIGHEST precision so the f32 check is tight) ----
    hp = jax.lax.Precision.HIGHEST
    A_h = jnp.asarray(_bilinear_matrix(H2, H))       # (H2, H)
    A_wT = jnp.asarray(_bilinear_matrix(W2, W).T)    # (W, W2)
    up = jnp.einsum('ph,bchw->bcpw', A_h, g, precision=hp)
    up = jnp.einsum('bcpw,wq->bcpq', up, A_wT, precision=hp)
    y = jax.lax.conv_general_dilated(up, w1, (1, 1), 'SAME',
                                     dimension_numbers=('NCHW', 'OIHW', 'NCHW'),
                                     feature_group_count=F_l, precision=hp)
    y = y + b1[None, :, None, None]
    y = jax.lax.conv_general_dilated(y, w2, (1, 1), 'SAME',
                                     dimension_numbers=('NCHW', 'OIHW', 'NCHW'),
                                     feature_group_count=F_l, precision=hp)
    y = y + b2[None, :, None, None]
    y = y * bn_scale[None, :, None, None] + bn_shift[None, :, None, None]
    ref = jax.nn.sigmoid(y) * x

    err = float(jnp.max(jnp.abs(out - ref)))
    assert jnp.allclose(out, ref, atol=1e-4, rtol=1e-4), f"max abs err = {err}"
    print("KERNEL_OK")
</pallas_src>

<mosaic_0001>
module attributes {stable_mosaic.version = 11 : i64} {
  func.func @kernel(%arg0: i32, %arg1: i32, %arg2: memref<1x1x16x64xf32, #tpu.memory_space<vmem>>, %arg3: memref<1x1x16x128xf32, #tpu.memory_space<vmem>>, %arg4: memref<64x384xf32, #tpu.memory_space<vmem>>, %arg5: memref<16x48xf32, #tpu.memory_space<vmem>>, %arg6: memref<3x3x16x128xf32, #tpu.memory_space<vmem>>, %arg7: memref<3x3x128xf32, #tpu.memory_space<vmem>>, %arg8: memref<2x128xf32, #tpu.memory_space<vmem>>, %arg9: memref<1x1x16x128xf32, #tpu.memory_space<vmem>>) attributes {dimension_semantics = [#tpu.dimension_semantics<parallel>, #tpu.dimension_semantics<parallel>], iteration_bounds = array<i64: 2, 1>, scalar_prefetch = 0 : i64, scratch_operands = 0 : i64, tpu.core_type = #tpu.core_type<tc>, window_params = [{transform_indices = @transform_0, window_bounds = array<i64: 1, 1, 16, 64>}, {transform_indices = @transform_1, window_bounds = array<i64: 1, 1, 16, 128>}, {pipeline_mode = #tpu.pipeline_mode<synchronous>, transform_indices = @transform_2, window_bounds = array<i64: 64, 384>}, {pipeline_mode = #tpu.pipeline_mode<synchronous>, transform_indices = @transform_3, window_bounds = array<i64: 16, 48>}, {transform_indices = @transform_4, window_bounds = array<i64: 3, 3, 16, 128>}, {transform_indices = @transform_5, window_bounds = array<i64: 3, 3, 128>}, {transform_indices = @transform_6, window_bounds = array<i64: 2, 128>}, {transform_indices = @transform_7, window_bounds = array<i64: 1, 1, 16, 128>}]} {
    %c0 = arith.constant 0 : index
    %c0_0 = arith.constant 0 : index
    %c0_1 = arith.constant 0 : index
    %c0_2 = arith.constant 0 : index
    %0 = vector.load %arg2[%c0, %c0_0, %c0_1, %c0_2] : memref<1x1x16x64xf32, #tpu.memory_space<vmem>>, vector<1x1x16x64xf32>
    %1 = vector.shape_cast %0 : vector<1x1x16x64xf32> to vector<16x64xf32>
    %c0_3 = arith.constant 0 : index
    %c0_4 = arith.constant 0 : index
    %2 = vector.load %arg4[%c0_3, %c0_4] : memref<64x384xf32, #tpu.memory_space<vmem>>, vector<64x384xf32>
    %cst = arith.constant dense<0.000000e+00> : vector<16x384xf32>
    %3 = tpu.matmul %1, %2, %cst {dimension_numbers = #tpu.dot_dimension_numbers<[1], [0], [0], [1], [0, 0, 1, 1], [], []>} : vector<16x64xf32>, vector<64x384xf32>, vector<16x384xf32> -> vector<16x384xf32>
    %c0_5 = arith.constant 0 : index
    %c0_6 = arith.constant 0 : index
    %c0_7 = arith.constant 0 : index
    %c0_8 = arith.constant 0 : index
    %4 = vector.load %arg6[%c0_5, %c0_6, %c0_7, %c0_8] : memref<3x3x16x128xf32, #tpu.memory_space<vmem>>, vector<1x1x16x128xf32>
    %5 = vector.shape_cast %4 : vector<1x1x16x128xf32> to vector<16x128xf32>
    %6 = vector.extract_strided_slice %3 {offsets = [0, 0], sizes = [16, 128], strides = [1, 1]} : vector<16x384xf32> to vector<16x128xf32>
    %7 = arith.mulf %5, %6 : vector<16x128xf32>
    %c0_9 = arith.constant 0 : index
    %c1 = arith.constant 1 : index
    %c0_10 = arith.constant 0 : index
    %c0_11 = arith.constant 0 : index
    %8 = vector.load %arg6[%c0_9, %c1, %c0_10, %c0_11] : memref<3x3x16x128xf32, #tpu.memory_space<vmem>>, vector<1x1x16x128xf32>
    %9 = vector.shape_cast %8 : vector<1x1x16x128xf32> to vector<16x128xf32>
    %10 = vector.extract_strided_slice %3 {offsets = [0, 128], sizes = [16, 128], strides = [1, 1]} : vector<16x384xf32> to vector<16x128xf32>
    %11 = arith.mulf %9, %10 : vector<16x128xf32>
    %12 = arith.addf %7, %11 : vector<16x128xf32>
    %c0_12 = arith.constant 0 : index
    %c2 = arith.constant 2 : index
    %c0_13 = arith.constant 0 : index
    %c0_14 = arith.constant 0 : index
    %13 = vector.load %arg6[%c0_12, %c2, %c0_13, %c0_14] : memref<3x3x16x128xf32, #tpu.memory_space<vmem>>, vector<1x1x16x128xf32>
    %14 = vector.shape_cast %13 : vector<1x1x16x128xf32> to vector<16x128xf32>
    %15 = vector.extract_strided_slice %3 {offsets = [0, 256], sizes = [16, 128], strides = [1, 1]} : vector<16x384xf32> to vector<16x128xf32>
    %16 = arith.mulf %14, %15 : vector<16x128xf32>
    %17 = arith.addf %12, %16 : vector<16x128xf32>
    %c1_15 = arith.constant 1 : index
    %c0_16 = arith.constant 0 : index
    %c0_17 = arith.constant 0 : index
    %c0_18 = arith.constant 0 : index
    %18 = vector.load %arg6[%c1_15, %c0_16, %c0_17, %c0_18] : memref<3x3x16x128xf32, #tpu.memory_space<vmem>>, vector<1x1x16x128xf32>
    %19 = vector.shape_cast %18 : vector<1x1x16x128xf32> to vector<16x128xf32>
    %20 = vector.extract_strided_slice %3 {offsets = [0, 0], sizes = [16, 128], strides = [1, 1]} : vector<16x384xf32> to vector<16x128xf32>
    %21 = arith.mulf %19, %20 : vector<16x128xf32>
    %c1_19 = arith.constant 1 : index
    %c1_20 = arith.constant 1 : index
    %c0_21 = arith.constant 0 : index
    %c0_22 = arith.constant 0 : index
    %22 = vector.load %arg6[%c1_19, %c1_20, %c0_21, %c0_22] : memref<3x3x16x128xf32, #tpu.memory_space<vmem>>, vector<1x1x16x128xf32>
    %23 = vector.shape_cast %22 : vector<1x1x16x128xf32> to vector<16x128xf32>
    %24 = vector.extract_strided_slice %3 {offsets = [0, 128], sizes = [16, 128], strides = [1, 1]} : vector<16x384xf32> to vector<16x128xf32>
    %25 = arith.mulf %23, %24 : vector<16x128xf32>
    %26 = arith.addf %21, %25 : vector<16x128xf32>
    %c1_23 = arith.constant 1 : index
    %c2_24 = arith.constant 2 : index
    %c0_25 = arith.constant 0 : index
    %c0_26 = arith.constant 0 : index
    %27 = vector.load %arg6[%c1_23, %c2_24, %c0_25, %c0_26] : memref<3x3x16x128xf32, #tpu.memory_space<vmem>>, vector<1x1x16x128xf32>
    %28 = vector.shape_cast %27 : vector<1x1x16x128xf32> to vector<16x128xf32>
    %29 = vector.extract_strided_slice %3 {offsets = [0, 256], sizes = [16, 128], strides = [1, 1]} : vector<16x384xf32> to vector<16x128xf32>
    %30 = arith.mulf %28, %29 : vector<16x128xf32>
    %31 = arith.addf %26, %30 : vector<16x128xf32>
    %c2_27 = arith.constant 2 : index
    %c0_28 = arith.constant 0 : index
    %c0_29 = arith.constant 0 : index
    %c0_30 = arith.constant 0 : index
    %32 = vector.load %arg6[%c2_27, %c0_28, %c0_29, %c0_30] : memref<3x3x16x128xf32, #tpu.memory_space<vmem>>, vector<1x1x16x128xf32>
    %33 = vector.shape_cast %32 : vector<1x1x16x128xf32> to vector<16x128xf32>
    %34 = vector.extract_strided_slice %3 {offsets = [0, 0], sizes = [16, 128], strides = [1, 1]} : vector<16x384xf32> to vector<16x128xf32>
    %35 = arith.mulf %33, %34 : vector<16x128xf32>
    %c2_31 = arith.constant 2 : index
    %c1_32 = arith.constant 1 : index
    %c0_33 = arith.constant 0 : index
    %c0_34 = arith.constant 0 : index
    %36 = vector.load %arg6[%c2_31, %c1_32, %c0_33, %c0_34] : memref<3x3x16x128xf32, #tpu.memory_space<vmem>>, vector<1x1x16x128xf32>
    %37 = vector.shape_cast %36 : vector<1x1x16x128xf32> to vector<16x128xf32>
    %38 = vector.extract_strided_slice %3 {offsets = [0, 128], sizes = [16, 128], strides = [1, 1]} : vector<16x384xf32> to vector<16x128xf32>
    %39 = arith.mulf %37, %38 : vector<16x128xf32>
    %40 = arith.addf %35, %39 : vector<16x128xf32>
    %c2_35 = arith.constant 2 : index
    %c2_36 = arith.constant 2 : index
    %c0_37 = arith.constant 0 : index
    %c0_38 = arith.constant 0 : index
    %41 = vector.load %arg6[%c2_35, %c2_36, %c0_37, %c0_38] : memref<3x3x16x128xf32, #tpu.memory_space<vmem>>, vector<1x1x16x128xf32>
    %42 = vector.shape_cast %41 : vector<1x1x16x128xf32> to vector<16x128xf32>
    %43 = vector.extract_strided_slice %3 {offsets = [0, 256], sizes = [16, 128], strides = [1, 1]} : vector<16x384xf32> to vector<16x128xf32>
    %44 = arith.mulf %42, %43 : vector<16x128xf32>
    %45 = arith.addf %40, %44 : vector<16x128xf32>
    %46 = tpu.concatenate %17, %31, %45 in 0 : vector<16x128xf32>, vector<16x128xf32>, vector<16x128xf32> -> vector<48x128xf32>
    %c0_39 = arith.constant 0 : index
    %c0_40 = arith.constant 0 : index
    %47 = vector.load %arg5[%c0_39, %c0_40] : memref<16x48xf32, #tpu.memory_space<vmem>>, vector<16x48xf32>
    %cst_41 = arith.constant dense<0.000000e+00> : vector<16x128xf32>
    %48 = tpu.matmul %47, %46, %cst_41 {dimension_numbers = #tpu.dot_dimension_numbers<[1], [0], [0], [1], [0, 0, 1, 1], [], []>} : vector<16x48xf32>, vector<48x128xf32>, vector<16x128xf32> -> vector<16x128xf32>
    %c0_42 = arith.constant 0 : index
    %c0_43 = arith.constant 0 : index
    %49 = vector.load %arg8[%c0_42, %c0_43] : memref<2x128xf32, #tpu.memory_space<vmem>>, vector<1x128xf32>
    %50 = vector.broadcast %49 : vector<1x128xf32> to vector<16x128xf32>
    %51 = arith.addf %48, %50 : vector<16x128xf32>
    %52 = tpu.iota {dimensions = array<i32: 0>} : vector<16x128xi32>
    %53 = tpu.iota {dimensions = array<i32: 1>} : vector<16x128xi32>
    %c16_i32 = arith.constant 16 : i32
    %c0_i32 = arith.constant 0 : i32
    %54 = arith.cmpi eq, %c16_i32, %c0_i32 : i32
    %c1_i32 = arith.constant 1 : i32
    %55 = arith.select %54, %c1_i32, %c16_i32 : i32
    %56 = vector.broadcast %55 : i32 to vector<16x128xi32>
    %57 = arith.remsi %53, %56 : vector<16x128xi32>
    %c0_i32_44 = arith.constant 0 : i32
    %58 = vector.broadcast %c0_i32_44 : i32 to vector<16x128xi32>
    %59 = arith.cmpi ne, %57, %58 : vector<16x128xi32>
    %c0_i32_45 = arith.constant 0 : i32
    %60 = vector.broadcast %c0_i32_45 : i32 to vector<16x128xi32>
    %61 = arith.cmpi slt, %57, %60 : vector<16x128xi32>
    %c0_i32_46 = arith.constant 0 : i32
    %62 = arith.cmpi slt, %55, %c0_i32_46 : i32
    %63 = vector.broadcast %62 : i1 to vector<16x128xi1>
    %64 = vector.broadcast %63 : vector<16x128xi1> to vector<16x128xi1>
    %65 = arith.xori %61, %64 : vector<16x128xi1>
    %66 = arith.andi %65, %59 : vector<16x128xi1>
    %67 = vector.broadcast %55 : i32 to vector<16x128xi32>
    %68 = arith.addi %57, %67 : vector<16x128xi32>
    %69 = arith.select %66, %68, %57 : vector<16x128xi1>, vector<16x128xi32>
    %c0_i32_47 = arith.constant 0 : i32
    %70 = vector.broadcast %c0_i32_47 : i32 to vector<16x128xi32>
    %71 = arith.cmpi sgt, %52, %70 : vector<16x128xi32>
    %c15_i32 = arith.constant 15 : i32
    %72 = vector.broadcast %c15_i32 : i32 to vector<16x128xi32>
    %73 = arith.cmpi slt, %52, %72 : vector<16x128xi32>
    %c0_i32_48 = arith.constant 0 : i32
    %74 = vector.broadcast %c0_i32_48 : i32 to vector<16x128xi32>
    %75 = arith.cmpi sgt, %69, %74 : vector<16x128xi32>
    %c15_i32_49 = arith.constant 15 : i32
    %76 = vector.broadcast %c15_i32_49 : i32 to vector<16x128xi32>
    %77 = arith.cmpi slt, %69, %76 : vector<16x128xi32>
    %cst_50 = arith.constant 0.000000e+00 : f32
    %78 = vector.broadcast %cst_50 : f32 to vector<16x128xf32>
    %c1_51 = arith.constant 1 : index
    %c0_52 = arith.constant 0 : index
    %79 = vector.load %arg8[%c1_51, %c0_52] : memref<2x128xf32, #tpu.memory_space<vmem>>, vector<1x128xf32>
    %80 = vector.broadcast %79 : vector<1x128xf32> to vector<16x128xf32>
    %81 = arith.addf %78, %80 : vector<16x128xf32>
    %c1_i32_53 = arith.constant 1 : i32
    %82 = tpu.dynamic_rotate %51 by %c1_i32_53 dim 0 : vector<16x128xf32>, i32 -> vector<16x128xf32>
    %cst_54 = arith.constant 0.000000e+00 : f32
    %83 = vector.broadcast %cst_54 : f32 to vector<16x128xf32>
    %84 = arith.select %71, %82, %83 : vector<16x128xi1>, vector<16x128xf32>
    %c1_i32_55 = arith.constant 1 : i32
    %85 = tpu.dynamic_rotate %84 by %c1_i32_55 dim 1 : vector<16x128xf32>, i32 -> vector<16x128xf32>
    %cst_56 = arith.constant 0.000000e+00 : f32
    %86 = vector.broadcast %cst_56 : f32 to vector<16x128xf32>
    %87 = arith.select %75, %85, %86 : vector<16x128xi1>, vector<16x128xf32>
    %c0_57 = arith.constant 0 : index
    %c0_58 = arith.constant 0 : index
    %c0_59 = arith.constant 0 : index
    %88 = vector.load %arg7[%c0_57, %c0_58, %c0_59] : memref<3x3x128xf32, #tpu.memory_space<vmem>>, vector<1x1x128xf32>
    %89 = vector.shape_cast %88 : vector<1x1x128xf32> to vector<1x128xf32>
    %90 = vector.broadcast %89 : vector<1x128xf32> to vector<16x128xf32>
    %91 = arith.mulf %90, %87 : vector<16x128xf32>
    %92 = arith.addf %81, %91 : vector<16x128xf32>
    %c0_60 = arith.constant 0 : index
    %c1_61 = arith.constant 1 : index
    %c0_62 = arith.constant 0 : index
    %93 = vector.load %arg7[%c0_60, %c1_61, %c0_62] : memref<3x3x128xf32, #tpu.memory_space<vmem>>, vector<1x1x128xf32>
    %94 = vector.shape_cast %93 : vector<1x1x128xf32> to vector<1x128xf32>
    %95 = vector.broadcast %94 : vector<1x128xf32> to vector<16x128xf32>
    %96 = arith.mulf %95, %84 : vector<16x128xf32>
    %97 = arith.addf %92, %96 : vector<16x128xf32>
    %c127_i32 = arith.constant 127 : i32
    %98 = tpu.dynamic_rotate %84 by %c127_i32 dim 1 : vector<16x128xf32>, i32 -> vector<16x128xf32>
    %cst_63 = arith.constant 0.000000e+00 : f32
    %99 = vector.broadcast %cst_63 : f32 to vector<16x128xf32>
    %100 = arith.select %77, %98, %99 : vector<16x128xi1>, vector<16x128xf32>
    %c0_64 = arith.constant 0 : index
    %c2_65 = arith.constant 2 : index
    %c0_66 = arith.constant 0 : index
    %101 = vector.load %arg7[%c0_64, %c2_65, %c0_66] : memref<3x3x128xf32, #tpu.memory_space<vmem>>, vector<1x1x128xf32>
    %102 = vector.shape_cast %101 : vector<1x1x128xf32> to vector<1x128xf32>
    %103 = vector.broadcast %102 : vector<1x128xf32> to vector<16x128xf32>
    %104 = arith.mulf %103, %100 : vector<16x128xf32>
    %105 = arith.addf %97, %104 : vector<16x128xf32>
    %c1_i32_67 = arith.constant 1 : i32
    %106 = tpu.dynamic_rotate %51 by %c1_i32_67 dim 1 : vector<16x128xf32>, i32 -> vector<16x128xf32>
    %cst_68 = arith.constant 0.000000e+00 : f32
    %107 = vector.broadcast %cst_68 : f32 to vector<16x128xf32>
    %108 = arith.select %75, %106, %107 : vector<16x128xi1>, vector<16x128xf32>
    %c1_69 = arith.constant 1 : index
    %c0_70 = arith.constant 0 : index
    %c0_71 = arith.constant 0 : index
    %109 = vector.load %arg7[%c1_69, %c0_70, %c0_71] : memref<3x3x128xf32, #tpu.memory_space<vmem>>, vector<1x1x128xf32>
    %110 = vector.shape_cast %109 : vector<1x1x128xf32> to vector<1x128xf32>
    %111 = vector.broadcast %110 : vector<1x128xf32> to vector<16x128xf32>
    %112 = arith.mulf %111, %108 : vector<16x128xf32>
    %113 = arith.addf %105, %112 : vector<16x128xf32>
    %c1_72 = arith.constant 1 : index
    %c1_73 = arith.constant 1 : index
    %c0_74 = arith.constant 0 : index
    %114 = vector.load %arg7[%c1_72, %c1_73, %c0_74] : memref<3x3x128xf32, #tpu.memory_space<vmem>>, vector<1x1x128xf32>
    %115 = vector.shape_cast %114 : vector<1x1x128xf32> to vector<1x128xf32>
    %116 = vector.broadcast %115 : vector<1x128xf32> to vector<16x128xf32>
    %117 = arith.mulf %116, %51 : vector<16x128xf32>
    %118 = arith.addf %113, %117 : vector<16x128xf32>
    %c127_i32_75 = arith.constant 127 : i32
    %119 = tpu.dynamic_rotate %51 by %c127_i32_75 dim 1 : vector<16x128xf32>, i32 -> vector<16x128xf32>
    %cst_76 = arith.constant 0.000000e+00 : f32
    %120 = vector.broadcast %cst_76 : f32 to vector<16x128xf32>
    %121 = arith.select %77, %119, %120 : vector<16x128xi1>, vector<16x128xf32>
    %c1_77 = arith.constant 1 : index
    %c2_78 = arith.constant 2 : index
    %c0_79 = arith.constant 0 : index
    %122 = vector.load %arg7[%c1_77, %c2_78, %c0_79] : memref<3x3x128xf32, #tpu.memory_space<vmem>>, vector<1x1x128xf32>
    %123 = vector.shape_cast %122 : vector<1x1x128xf32> to vector<1x128xf32>
    %124 = vector.broadcast %123 : vector<1x128xf32> to vector<16x128xf32>
    %125 = arith.mulf %124, %121 : vector<16x128xf32>
    %126 = arith.addf %118, %125 : vector<16x128xf32>
    %c15_i32_80 = arith.constant 15 : i32
    %127 = tpu.dynamic_rotate %51 by %c15_i32_80 dim 0 : vector<16x128xf32>, i32 -> vector<16x128xf32>
    %cst_81 = arith.constant 0.000000e+00 : f32
    %128 = vector.broadcast %cst_81 : f32 to vector<16x128xf32>
    %129 = arith.select %73, %127, %128 : vector<16x128xi1>, vector<16x128xf32>
    %c1_i32_82 = arith.constant 1 : i32
    %130 = tpu.dynamic_rotate %129 by %c1_i32_82 dim 1 : vector<16x128xf32>, i32 -> vector<16x128xf32>
    %cst_83 = arith.constant 0.000000e+00 : f32
    %131 = vector.broadcast %cst_83 : f32 to vector<16x128xf32>
    %132 = arith.select %75, %130, %131 : vector<16x128xi1>, vector<16x128xf32>
    %c2_84 = arith.constant 2 : index
    %c0_85 = arith.constant 0 : index
    %c0_86 = arith.constant 0 : index
    %133 = vector.load %arg7[%c2_84, %c0_85, %c0_86] : memref<3x3x128xf32, #tpu.memory_space<vmem>>, vector<1x1x128xf32>
    %134 = vector.shape_cast %133 : vector<1x1x128xf32> to vector<1x128xf32>
    %135 = vector.broadcast %134 : vector<1x128xf32> to vector<16x128xf32>
    %136 = arith.mulf %135, %132 : vector<16x128xf32>
    %137 = arith.addf %126, %136 : vector<16x128xf32>
    %c2_87 = arith.constant 2 : index
    %c1_88 = arith.constant 1 : index
    %c0_89 = arith.constant 0 : index
    %138 = vector.load %arg7[%c2_87, %c1_88, %c0_89] : memref<3x3x128xf32, #tpu.memory_space<vmem>>, vector<1x1x128xf32>
    %139 = vector.shape_cast %138 : vector<1x1x128xf32> to vector<1x128xf32>
    %140 = vector.broadcast %139 : vector<1x128xf32> to vector<16x128xf32>
    %141 = arith.mulf %140, %129 : vector<16x128xf32>
    %142 = arith.addf %137, %141 : vector<16x128xf32>
    %c127_i32_90 = arith.constant 127 : i32
    %143 = tpu.dynamic_rotate %129 by %c127_i32_90 dim 1 : vector<16x128xf32>, i32 -> vector<16x128xf32>
    %cst_91 = arith.constant 0.000000e+00 : f32
    %144 = vector.broadcast %cst_91 : f32 to vector<16x128xf32>
    %145 = arith.select %77, %143, %144 : vector<16x128xi1>, vector<16x128xf32>
    %c2_92 = arith.constant 2 : index
    %c2_93 = arith.constant 2 : index
    %c0_94 = arith.constant 0 : index
    %146 = vector.load %arg7[%c2_92, %c2_93, %c0_94] : memref<3x3x128xf32, #tpu.memory_space<vmem>>, vector<1x1x128xf32>
    %147 = vector.shape_cast %146 : vector<1x1x128xf32> to vector<1x128xf32>
    %148 = vector.broadcast %147 : vector<1x128xf32> to vector<16x128xf32>
    %149 = arith.mulf %148, %145 : vector<16x128xf32>
    %150 = arith.addf %142, %149 : vector<16x128xf32>
    %151 = arith.negf %150 : vector<16x128xf32>
    %152 = math.exp %151 : vector<16x128xf32>
    %cst_95 = arith.constant 1.000000e+00 : f32
    %153 = vector.broadcast %cst_95 : f32 to vector<16x128xf32>
    %154 = arith.addf %153, %152 : vector<16x128xf32>
    %155 = arith.divf %153, %154 : vector<16x128xf32>
    %c0_96 = arith.constant 0 : index
    %c0_97 = arith.constant 0 : index
    %c0_98 = arith.constant 0 : index
    %c0_99 = arith.constant 0 : index
    %156 = vector.load %arg3[%c0_96, %c0_97, %c0_98, %c0_99] : memref<1x1x16x128xf32, #tpu.memory_space<vmem>>, vector<1x1x16x128xf32>
    %157 = vector.shape_cast %156 : vector<1x1x16x128xf32> to vector<16x128xf32>
    %158 = arith.mulf %155, %157 : vector<16x128xf32>
    %c0_100 = arith.constant 0 : index
    %c0_101 = arith.constant 0 : index
    %c0_102 = arith.constant 0 : index
    %c0_103 = arith.constant 0 : index
    %159 = vector.load %arg9[%c0_100, %c0_101, %c0_102, %c0_103] : memref<1x1x16x128xf32, #tpu.memory_space<vmem>>, vector<1x1x16x128xf32>
    %160 = vector.shape_cast %159 : vector<1x1x16x128xf32> to vector<16x128xf32>
    %161 = vector.shape_cast %158 : vector<16x128xf32> to vector<1x1x16x128xf32>
    tpu.vector_store %arg9[%c0_100, %c0_101, %c0_102, %c0_103], %161 {strides = array<i32>} : memref<1x1x16x128xf32, #tpu.memory_space<vmem>>, vector<1x1x16x128xf32>,
    return
  }
  func.func @transform_0(%arg0: i32, %arg1: i32) -> (i32, i32, i32, i32) {
    %c0_i32 = arith.constant 0 : i32
    %c0_i32_0 = arith.constant 0 : i32
    %c0_i32_1 = arith.constant 0 : i32
    return %arg0, %arg1, %c0_i32, %c0_i32_0 : i32, i32, i32, i32
  }
  func.func @transform_1(%arg0: i32, %arg1: i32) -> (i32, i32, i32, i32) {
    %c0_i32 = arith.constant 0 : i32
    %c0_i32_0 = arith.constant 0 : i32
    %c0_i32_1 = arith.constant 0 : i32
    return %arg0, %arg1, %c0_i32, %c0_i32_0 : i32, i32, i32, i32
  }
  func.func @transform_2(%arg0: i32, %arg1: i32) -> (i32, i32) {
    %c0_i32 = arith.constant 0 : i32
    %c0_i32_0 = arith.constant 0 : i32
    %c0_i32_1 = arith.constant 0 : i32
    return %c0_i32, %c0_i32_0 : i32, i32
  }
  func.func @transform_3(%arg0: i32, %arg1: i32) -> (i32, i32) {
    %c0_i32 = arith.constant 0 : i32
    %c0_i32_0 = arith.constant 0 : i32
    %c0_i32_1 = arith.constant 0 : i32
    return %c0_i32, %c0_i32_0 : i32, i32
  }
  func.func @transform_4(%arg0: i32, %arg1: i32) -> (i32, i32, i32, i32) {
    %c0_i32 = arith.constant 0 : i32
    %c0_i32_0 = arith.constant 0 : i32
    %c0_i32_1 = arith.constant 0 : i32
    %c0_i32_2 = arith.constant 0 : i32
    return %c0_i32, %c0_i32_0, %c0_i32_1, %arg1 : i32, i32, i32, i32
  }
  func.func @transform_5(%arg0: i32, %arg1: i32) -> (i32, i32, i32) {
    %c0_i32 = arith.constant 0 : i32
    %c0_i32_0 = arith.constant 0 : i32
    %c0_i32_1 = arith.constant 0 : i32
    return %c0_i32, %c0_i32_0, %arg1 : i32, i32, i32
  }
  func.func @transform_6(%arg0: i32, %arg1: i32) -> (i32, i32) {
    %c0_i32 = arith.constant 0 : i32
    %c0_i32_0 = arith.constant 0 : i32
    return %c0_i32, %arg1 : i32, i32
  }
  func.func @transform_7(%arg0: i32, %arg1: i32) -> (i32, i32, i32, i32) {
    %c0_i32 = arith.constant 0 : i32
    %c0_i32_0 = arith.constant 0 : i32
    %c0_i32_1 = arith.constant 0 : i32
    return %arg0, %arg1, %c0_i32, %c0_i32_0 : i32, i32, i32, i32
  }
}

</mosaic_0001>

<bundles_post_ra>
// kernel: tpu_custom_call.1
= control target key start
LH: loop header
LB: loop body
LE: loop exit
PB: predicated region body
PF: predicated region fallthrough
CT: control target
= control target key end

     0   :  { %s1799_s0 = inlined_call_operand.hbm [shape: f32[2,1,16,64], index: 0, kind: input, shape index: {}]   ;;  %s1800_s1 = inlined_call_operand.hbm [shape: f32[2,1,16,128], index: 1, kind: input, shape index: {}]   ;;  %s1801_s2 = inlined_call_operand.hbm [shape: f32[64,384], index: 2, kind: input, shape index: {}]   ;;  %s1802_s3 = inlined_call_operand.hbm [shape: f32[16,48], index: 3, kind: input, shape index: {}]   ;;  %s1803_s4 = inlined_call_operand.hbm [shape: f32[3,3,16,128], index: 4, kind: input, shape index: {}]   ;;  %s1804_s5 = inlined_call_operand.hbm [shape: f32[3,3,128], index: 5, kind: input, shape index: {}]   ;;  %s1805_s6 = inlined_call_operand.vmem [shape: f32[2,128], index: 6, kind: input, shape index: {}]   ;;  %s1806_s7 = inlined_call_operand.hbm [shape: f32[2,1,16,128], index: 7, kind: output, shape index: {}]  }
   0x1   :  { %1814 = sst [smem:[#allocation24_spill]] %s1801_s2 }
   0x2   :  { %1815 = sst [smem:[#allocation25_spill]] %s1802_s3 }
   0x3   :  { %1816 = sst [smem:[#allocation26_spill]] %s1803_s4 }
   0x4   :  { %1817 = sst [smem:[#allocation27_spill]] %s1804_s5 }
   0x5   :  { %12 = vsyncpa [#allocation3], 0 }
   0x6   :  { %14 = vsyncpa [#allocation3 + $0x1], 0 }
   0x7   :  { %15 = vsyncpa [#allocation6], 0 }
   0x8   :  { %17 = vsyncpa [#allocation6 + $0x1], 0 }
   0x9   :  { %18 = vsyncpa [#allocation9], 0 }
   0xa   :  { %19 = vsyncpa [#allocation12], 0 }
   0xb   :  { %20 = vsyncpa [#allocation4], 0 }
   0xc   :  { %22 = vsyncpa [#allocation4 + $0x1], 0  ;;  %s1528_s24 = smov 0   ;;  %s1530_s25 = smov 0  }
   0xd   :  { %s1532_s26 = smov 0   ;;  %s1534_s27 = smov 0  }
   0xe   :  { %s1536_s28 = smov 0   ;;  %s1538_s29 = smov 0  }
   0xf LB: > { %1818 = sst [smem:[#allocation20_spill]] %s1460_s26  ;;  %s1559_s30 = sadd.s32 4294967295, %s1472_s29   ;;  %s1472_s29 = sphi %s1538_s29, %s28_s29   ;;  %s1468_s28 = sphi %s1536_s28, %s1841_s28   ;;  %s1464_s27 = sphi %s1534_s27, %s1840_s27   ;;  %s1460_s26 = sphi %s1532_s26, %s1839_s26   ;;  %s1456_s25 = sphi %s1530_s25, %s1843_s25   ;;  %s1452_s24 = sphi %s1528_s24, %s1842_s24  }
  0x10   : > { %1819 = sst [smem:[#allocation21_spill]] %s1468_s28  ;;  %s1017_s8 = sadd.s32 4294967294, %s1472_s29  }
  0x11   : > { %p62_p0 = scmp.ne.s32.totalorder %s1456_s25, %s1452_s24  ;;  %p63_p1 = scmp.eq.s32.totalorder %s1559_s30, 0 }
  0x12   : > { %p236_p2 = scmp.eq.s32.totalorder %s1559_s30, 1  ;;  %p242_p3 = scmp.eq.s32.totalorder %s1017_s8, 1 }
  0x13   : > { %p1568_p4 = por %p63_p1, %p62_p0  ;;  %p1018_p5 = scmp.ge.s32.totalorder %s1472_s29, 1 }
  0x14   : > { %p1573_p6 = por %p242_p3, %p62_p0  ;;  %p249_p7 = scmp.lt.s32.totalorder %s1472_s29, 3 }
  0x15   : > { %s1822_s2 = sld [smem:[#allocation24_spill]]  ;;  %s1474_s15 = smov [#allocation7]  }
  0x16   : > { %p1581_p8 = pnand %p1018_p5, %p249_p7  ;;  %s262_s16 = sshll.u32 %s1474_s15, 4  ;;  %s263_s16 = int_to_ptr.vmem [resolvable:$true] %s262_s16 }
  0x17   : > { %p1024_p11 = scmp.ge.s32.totalorder %s1472_s29, 2  ;;  %s1825_s3 = sld [smem:[#allocation25_spill]] }
  0x18   : > { %p1079_p9 = pneg %p1581_p8  ;;  %s1475_s21 = smov 384  }
  0x19   : > { %s1476_s22 = smov 24   ;;  %s1477_s23 = smov [#allocation8]  }
  0x1a   : > { %p1589_p10 = pnand %p1079_p9, %p63_p1  ;;  %s276_s8 = sshll.u32 %s1477_s23, 4  ;;  %s277_s8 = int_to_ptr.vmem [resolvable:$true] %s276_s8 }
  0x1b   : > { %s260_s13 = sshll.u32 %s1822_s2, 4  ;;  %s1807_s11 = smov 128   ;;  %s261_s13 = int_to_ptr.hbm [resolvable:$true] %s260_s13 }
  0x1c   : > { %1082 = dma.hbm_to_vmem [thread:$0]  (!%p1589_p10), %s261_s13, 3072, %s263_s16, [#allocation6], %s1475_s21, %s1475_s21, %s1476_s22  }
  0x1d   : > { %s274_s20 = sshll.u32 %s1825_s3, 4  ;;  %s1809_s12 = smov 8   ;;  %s275_s20 = int_to_ptr.hbm [resolvable:$true] %s274_s20 }
  0x1e   : > { %1085 = dma.hbm_to_vmem [thread:$0]  (!%p1589_p10), %s275_s20, 256, %s277_s8, [#allocation9], %s1807_s11, %s1807_s11, %s1809_s12  }
  0x1f   : > { %s1826_s4 = sld [smem:[#allocation26_spill]]  ;;  %s1480_s13 = smov [#allocation10]  }
  0x20   : > { %s292_s16 = sshll.u32 %s1480_s13, 4  ;;  %s1827_s5 = sld [smem:[#allocation27_spill]]  ;;  %s293_s16 = int_to_ptr.vmem [resolvable:$true] %s292_s16 }
  0x21   : > { %s1481_s20 = smov [#allocation11]   ;;  %s1482_s15 = smov 64  }
  0x22   : > { %s308_s8 = sshll.u32 %s1481_s20, 4  ;;  %s1483_s18 = smov 4   ;;  %s309_s8 = int_to_ptr.vmem [resolvable:$true] %s308_s8 }
  0x23   : > { %s40_s13 = sadd.s32 1, %s1468_s28  ;;  %s49_s21 = sadd.s32 1, %s1460_s26 }
  0x24   : > { %p42_p12 = scmp.ge.s32.totalorder %s40_s13, 2  ;;  %p56_p13 = scmp.ne.s32.totalorder %s1460_s26, %s1456_s25 }
  0x25   : > { %s290_s19 = sshll.u32 %s1826_s4, 4  ;;  %p57_p0 = scmp.eq.s32.totalorder %s1472_s29, 0  ;;  %s291_s19 = int_to_ptr.hbm [resolvable:$true] %s290_s19 }
  0x26   : > { %s306_s23 = sshll.u32 %s1827_s5, 4  ;;  %p1107_p3 = scmp.lt.s32.totalorder %s1472_s29, 2  ;;  %s307_s23 = int_to_ptr.hbm [resolvable:$true] %s306_s23 }
  0x27   : > { %1088 = dma.hbm_to_vmem [thread:$0]  (!%p1589_p10), %s291_s19, 2304, %s293_s16, [#allocation9], %s1807_s11, %s1807_s11, %s1809_s12  }
  0x28   : > { %1091 = dma.hbm_to_vmem [thread:$0]  (!%p1589_p10), %s307_s23, 192, %s309_s8, [#allocation12], %s1482_s15, %s1482_s15, %s1483_s18  }
  0x29   : > { %s1845_s13 = smov (%p42_p12, %s40_s13), 0  ;;  %p1625_p5 = por %p57_p0, %p56_p13 }
  0x2a   : > { %1828 = sst [smem:[#allocation22_spill]] %s1845_s13  ;;  %p1631_p7 = por %p236_p2, %p56_p13 }
  0x2b   : > { %s44_s16 = ssub.s32 %s1468_s28, %s1845_s13  ;;  %s329_s22 = sand.u32 1, %s1460_s26  }
  0x2c   : > { %p47_p9 = scmp.eq.s32.totalorder %s44_s16, 0  ;;  %s1025_s23 = sshll.u32 %s329_s22, 4 }
  0x2d   : > { %s1054_s20 = sshll.u32 %s1468_s28, 4  ;;  %s333_s2 = scalar_lea.vmem [#allocation2], %s1025_s23 }
  0x2e   : > { %s1640_s8 = scalar_select %p47_p9, %s1460_s26, %s49_s21  }
  0x2f   : > { %s340_s11 = scalar_lea.hbm %s1799_s0, %s1054_s20  ;;  %s343_s3 = sshll.u32 %s333_s2, 4  ;;  %s344_s3 = int_to_ptr.vmem [resolvable:$true] %s343_s3 }
  0x30   : > { %1831 = sst [smem:[#allocation23_spill]] %s1640_s8  ;;  %s341_s12 = sshll.u32 %s340_s11, 4  ;;  %s342_s12 = int_to_ptr.hbm [resolvable:$true] %s341_s12 }
  0x31   : > { %p1093_p2 = pnand %p1107_p3, %p1625_p5  ;;  %s364_s16 = scalar_lea.hbm %s1800_s1, %s1054_s20 }
  0x32   : > { %s357_s13 = scalar_lea.vmem [#allocation5], %s1025_s23  ;;  %s365_s28 = sshll.u32 %s364_s16, 4  ;;  %s366_s28 = int_to_ptr.hbm [resolvable:$true] %s365_s28 }
  0x33   : > { %s367_s21 = sshll.u32 %s357_s13, 4  ;;  %s330_s8 = scalar_lea.sflag [#allocation3], %s329_s22  ;;  %s368_s21 = int_to_ptr.vmem [resolvable:$true] %s367_s21 }
  0x34   : > { %s1832_s26 = smov 8   ;;  %s1833_s15 = smov 128  }
  0x35   : > { %1095 = dma.hbm_to_vmem [thread:$0]  (!%p1093_p2), %s342_s12, 256, %s344_s3, %s330_s8, %s1833_s15, %s1833_s15, %s1832_s26  }
  0x36   : > { %s353_s2 = sand.u32 1, %s1472_s29   ;;  %379 = sbr.rel (%p1581_p8) target bundleno = 567 (0x237), region = 48 }
  0x37   : > { %s354_s11 = scalar_lea.sflag [#allocation6], %s353_s2  ;;  %s1662_s4 = sand.u32 (!%p1581_p8), 1, %s1456_s25  }
  0x38   : > { %1098 = dma.hbm_to_vmem [thread:$0]  (!%p1093_p2), %s366_s28, 256, %s368_s21, %s354_s11, %s1833_s15, %s1833_s15, %s1832_s26  }
  0x39   : > { %s1665_s5 = sshll.u32 (!%p1581_p8), %s1662_s4, 4  ;;  %s382_s3 = scalar_lea.sflag (!%p1581_p8), [#allocation3], %s1662_s4 }
  0x3a   : > { %s385_s12 = scalar_lea.vmem (!%p1581_p8), [#allocation2], %s1665_s5 }
  0x3b   : > { %1427 = dma.done.wait (%p1568_p4), %s382_s3, 256  }
  0x3c   : > { %1429 = vsyncadd (%p1568_p4), %s382_s3, 4294967040  ;;  %s391_s26 = sand.u32 1, %s1559_s30   ;;  %s395_s14 = scalar_lea.vmem [#allocation5], %s1665_s5 }
  0x3d   : > { %s392_s28 = scalar_lea.sflag [#allocation6], %s391_s26 }
  0x3e   : > { %1431 = dma.done.wait (%p1568_p4), %s392_s28, 256  }
  0x3f   : > { %1433 = vsyncadd (%p1568_p4), %s392_s28, 4294967040 }
  0x40   : > { %1435 = dma.done.wait (%p63_p1), [#allocation6], 3072  }
  0x41   : > { %1437 = vsyncadd (%p63_p1), [#allocation6], 4294964224 }
  0x42   : > { %1439 = dma.done.wait (%p63_p1), [#allocation9], 2560  }
  0x43   : > { %1441 = vsyncadd (%p63_p1), [#allocation9], 4294964736 }
  0x44   : > { %1443 = dma.done.wait (%p63_p1), [#allocation12], 192  }
  0x45   : > { %1445 = vsyncadd (%p63_p1), [#allocation12], 4294967104  ;;  %v485_v0 = vld [vmem:[#allocation7 + $0xb8] sm:$0xff]  ;;  %v482_v1 = vld [vmem:[#allocation7 + $0xa0] sm:$0xff]  ;;  %vm486_vm0 = vcmask 523264   ;;  %vm622_vm1 = vcmask 392192  }
  0x46   : > { %v483_v2 = vld [vmem:[#allocation7 + $0xa8] sm:$0xff]  ;;  %547 = vmatpush.msra.mxu2 %v485_v0  ;;  %v484_v3 = vld [vmem:[#allocation7 + $0xb0] sm:$0xff]  ;;  %v481_v6 = vld [vmem:[#allocation7 + $0x98] sm:$0xff]  ;;  %s1484_s13 = smov 1   ;;  %s1485_s19 = smov 127  }
  0x47   : > { %501 = vmatpush.msra.mxu0 %v483_v2  ;;  %v480_v4 = vld [vmem:[#allocation7 + $0x90] sm:$0xff]  ;;  %524 = vmatpush.msra.mxu1 %v484_v3  ;;  %v479_v5 = vld [vmem:[#allocation7 + $0x88] sm:$0xff]  ;;  %v477_v7 = vld [vmem:[#allocation7 + $0x78] sm:$0xff]  ;;  %s1056_s20 = sshll.u32 %s1464_s27, 4  ;;  %s455_s27 = scalar_lea.vmem [#allocation13], %s1665_s5 }
  0x48   : > { %548 = vmatpush.msra.mxu2 %v482_v1  ;;  %v478_v8 = vld [vmem:[#allocation7 + $0x80] sm:$0xff]  ;;  %v476_v9 = vld [vmem:[#allocation7 + $0x70] sm:$0xff]  ;;  %v475_v11 = vld [vmem:[#allocation7 + $0x68] sm:$0xff]  ;;  %s842_s16 = scalar_lea.hbm %s1806_s7, %s1056_s20  ;;  %s843_s21 = sshll.u32 %s455_s27, 4  ;;  %s844_s21 = int_to_ptr.vmem [resolvable:$true] %s843_s21 }
  0x49   : > { %502 = vmatpush.msra.mxu0 %v480_v4  ;;  %525 = vmatpush.msra.mxu1 %v481_v6  ;;  %v474_v10 = vld [vmem:[#allocation7 + $0x60] sm:$0xff]  ;;  %v473_v12 = vld [vmem:[#allocation7 + $0x58] sm:$0xff]  ;;  %v471_v13 = vld [vmem:[#allocation7 + $0x48] sm:$0xff]  ;;  %s845_s15 = sshll.u32 %s842_s16, 4  ;;  %s829_s2 = scalar_lea.sflag [#allocation4], %s1662_s4  ;;  %s846_s15 = int_to_ptr.hbm [resolvable:$true] %s845_s15 }
  0x4a   : > { %549 = vmatpush.msra.mxu2 %v479_v5  ;;  %v470_v14 = vld [vmem:[#allocation7 + $0x40] sm:$0xff]  ;;  %v472_v15 = vld [vmem:[#allocation7 + $0x50] sm:$0xff]  ;;  %v467_v17 = vld [vmem:[#allocation7 + $0x28] sm:$0xff]  ;;  %s1388_s11 = sshra.s32 %s846_s15, 4  ;;  %s1394_s5 = scalar_lea.hbm %s1806_s7, 32  ;;  %s1389_s11 = int_to_ptr.hbm [resolvable:$true] %s1388_s11 }
  0x4b   : > { %503 = vmatpush.msra.mxu0 %v477_v7  ;;  %526 = vmatpush.msra.mxu1 %v478_v8  ;;  %v468_v16 = vld [vmem:[#allocation7 + $0x30] sm:$0xff]  ;;  %v469_v18 = vld [vmem:[#allocation7 + $0x38] sm:$0xff]  ;;  %v466_v20 = vld [vmem:[#allocation7 + $0x20] sm:$0xff]  ;;  %s1390_s3 = scalar_lea.hbm %s1389_s11, 16  ;;  %p1395_p10 = scmp.lt.s32.totalorder %s1389_s11, %s1806_s7 }
  0x4c   : > { %550 = vmatpush.msra.mxu2 %v476_v9  ;;  %v465_v19 = vld [vmem:[#allocation7 + $0x18] sm:$0xff]  ;;  %v464_v21 = vld [vmem:[#allocation7 + $0x10] sm:$0xff]  ;;  %v462_v22 = vld [vmem:[#allocation7] sm:$0xff]  ;;  %p1391_p1 = scmp.ne.s32.totalorder %s1389_s11, %s1390_s3  ;;  %p1396_p12 = scmp.lt.s32.totalorder %s1394_s5, %s1390_s3 }
  0x4d   : > { %504 = vmatpush.msra.mxu0 %v474_v10  ;;  %527 = vmatpush.msra.mxu1 %v475_v11  ;;  %v460_v23 = vld [vmem:[%s385_s12] sm:$0xff]  ;;  %v463_v24 = vld [vmem:[#allocation7 + $0x8] sm:$0xff]  ;;  %v601_v29 = vld [vmem:[#allocation10 + $0x68] sm:$0xff] }
  0x4e   : > { %551 = vmatpush.msra.mxu2 %v473_v12  ;;  %v461_v25 = vld [vmem:[%s385_s12 + $0x8] sm:$0xff]  ;;  %v600_v30 = vld [vmem:[#allocation10 + $0x60] sm:$0xff]  ;;  %v605_v31 = vld [vmem:[#allocation10 + $0x70] sm:$0xff]  ;;  %p1392_p4 = pnand %p1391_p1, %p1631_p7  ;;  %p1397_p13 = por %p1396_p12, %p1395_p10 }
  0x4f   : > { %505 = vmatpush.msra.mxu0 %v471_v13  ;;  %528 = vmatpush.msra.mxu1 %v472_v15  ;;  %v606_v32 = vld [vmem:[#allocation10 + $0x78] sm:$0xff]  ;;  %v587_v37 = vld [vmem:[#allocation10 + $0x48] sm:$0xff]  ;;  %v581_v38 = vld [vmem:[#allocation10 + $0x30] sm:$0xff] }
  0x50   : > { %552 = vmatpush.msra.mxu2 %v470_v14  ;;  %v582_v35 = vld [vmem:[#allocation10 + $0x38] sm:$0xff]  ;;  %v586_v42 = vld [vmem:[#allocation10 + $0x40] sm:$0xff]  ;;  %v613_v43 = vld [vmem:[#allocation10 + $0x88] sm:$0xff]  ;;  %p1393_p8 = pneg %p1392_p4 }
  0x51   : > { %506 = vmatpush.msra.mxu0 %v468_v16  ;;  %529 = vmatpush.msra.mxu1 %v469_v18  ;;  %v612_v44 = vld [vmem:[#allocation10 + $0x80] sm:$0xff]  ;;  %v563_v45 = vld [vmem:[#allocation10 + $0x8] sm:$0xff]  ;;  %v568_v50 = vld [vmem:[#allocation10 + $0x18] sm:$0xff] }
  0x52   : > { %553 = vmatpush.msra.mxu2 %v467_v17  ;;  %v594_v52 = vld [vmem:[#allocation10 + $0x58] sm:$0xff]  ;;  %v562_v53 = vld [vmem:[#allocation10] sm:$0xff]  ;;  %v567_v58 = vld [vmem:[#allocation10 + $0x10] sm:$0xff]  ;;  %p1398_p0 = pnand %p1397_p13, %p1393_p8 }
  0x53   : > { %507 = vmatpush.msra.mxu0 %v465_v19  ;;  %530 = vmatpush.msra.mxu1 %v466_v20  ;;  %v593_v60 = vld [vmem:[#allocation10 + $0x50] sm:$0xff]  ;;  %v575_v2 = vld [vmem:[#allocation10 + $0x28] sm:$0xff]  ;;  %v574_v7 = vld [vmem:[#allocation10 + $0x20] sm:$0xff] }
  0x54   : > { %554 = vmatpush.msra.mxu2 %v464_v21  ;;  %v618_v16 = vld [vmem:[#allocation8] sm:$0xff]  ;;  %v619_v17 = vld [vmem:[#allocation8 + $0x8] sm:$0xff]  ;;  %v652_v21 = vlaneseq }
  0x55   : > { %508 = vmatpush.msra.mxu0 %v462_v22  ;;  %1043 = vmatmul.msk.f32.vlgmr.msra.gmra.mxu2 %vm486_vm0, %v460_v23  ;;  %v1175_v18 = vld [vmem:[%s1805_s6] ss:$0 sm:$0xff] }
  0x56   : > { %531 = vmatpush.msra.mxu1 %v463_v24  ;;  %1039 = vmatmul.msk.f32.vlgmr.msra.gmra.mxu0 %vm486_vm0, %v460_v23  ;;  %v653_v22 = vshrl.u32 %v652_v21, 7 }
  0x57   : > { %1041 = vmatmul.msk.f32.vlgmr.msra.gmra.mxu1 %vm486_vm0, %v460_v23 }
  0x58   : > { %vm680_vm2 = vcmp.lt.s32.totalorder %v653_v22, 1  ;;  %vm748_vm3 = vcmp.lt.s32.totalorder %v653_v22, 7  ;;  %vm669_vm4 = vcmp.gt.s32.totalorder %v653_v22, 0 }
  0x5d   : > { %1044 = vmatmul.msk.f32.gmra.mxu2 %vm486_vm0, %v461_v25 }
  0x5e   : > { %1040 = vmatmul.msk.f32.gmra.mxu0 %vm486_vm0, %v461_v25 }
  0x5f   : > { %1042 = vmatmul.msk.f32.gmra.mxu1 %vm486_vm0, %v461_v25 }
  0xd3   : > { %v510_v26 = vpop.f32.mrf.mxu0 }
  0xd4   : > { %v533_v27 = vpop.f32.mrf.mxu1  ;;  %v602_v39 = vmul.f32 %v600_v30, %v510_v26  ;;  %v583_v49 = vmul.f32 %v581_v38, %v510_v26  ;;  %v564_v1 = vmul.f32 %v562_v53, %v510_v26 }
  0xd5   : > { %v607_v40 = vmul.f32 %v605_v31, %v533_v27  ;;  %v588_v54 = vmul.f32 %v586_v42, %v533_v27  ;;  %v569_v3 = vmul.f32 %v567_v58, %v533_v27 }
  0xd7   : > { %v609_v56 = vadd.f32 %v607_v40, %v602_v39  ;;  %v590_v5 = vadd.f32 %v588_v54, %v583_v49  ;;  %v571_v12 = vadd.f32 %v569_v3, %v564_v1  ;;  %v1183_v39 = vld [vmem:[#allocation11] ss:$0 sm:$0xff]  ;;  %v1176_v40 = vld [vmem:[#allocation11 + $0x1] ss:$0 sm:$0xff]  ;;  %v1178_v54 = vld [vmem:[#allocation11 + $0x4] ss:$0 sm:$0xff] }
  0xd8   : > { %v556_v28 = vpop.f32.mrf.mxu2 }
  0xd9   : > { %v614_v57 = vmul.f32 %v612_v44, %v556_v28  ;;  %v595_v6 = vmul.f32 %v593_v60, %v556_v28  ;;  %v576_v13 = vmul.f32 %v574_v7, %v556_v28 }
  0xdb   : > { %v513_v33 = vpop.f32.mrf.mxu0  ;;  %v616_v4 = vadd.f32 %v614_v57, %v609_v56  ;;  %v597_v11 = vadd.f32 %v595_v6, %v590_v5  ;;  %v578_v15 = vadd.f32 %v576_v13, %v571_v12 }
  0xdc   : > { %v536_v34 = vpop.f32.mrf.mxu1  ;;  %v603_v36 = vmul.f32 %v601_v29, %v513_v33  ;;  %v584_v46 = vmul.f32 %v582_v35, %v513_v33  ;;  %v565_v59 = vmul.f32 %v563_v45, %v513_v33 }
  0xdd   : > { %v608_v41 = vmul.f32 %v606_v32, %v536_v34  ;;  %v589_v47 = vmul.f32 %v587_v37, %v536_v34  ;;  %v570_v61 = vmul.f32 %v568_v50, %v536_v34  ;;  %v654_v32 = vadd.s32 8, %v653_v22 }
  0xdf   : > { %v610_v48 = vadd.f32 %v608_v41, %v603_v36  ;;  %v591_v0 = vadd.f32 %v589_v47, %v584_v46  ;;  %v572_v10 = vadd.f32 %v570_v61, %v565_v59  ;;  %vm672_vm5 = vcmp.lt.s32.totalorder %v654_v32, 15  ;;  %v1184_v61 = vld [vmem:[#allocation11 + $0x5] ss:$0 sm:$0xff]  ;;  %v1180_v32 = vld [vmem:[#allocation11 + $0xa] ss:$0 sm:$0xff] }
  0xe0   : > { %v559_v51 = vpop.f32.mrf.mxu2  ;;  %v656_v36 = vand.u32 127, %v652_v21 }
  0xe1   : > { %v615_v55 = vmul.f32 %v613_v43, %v559_v51  ;;  %v596_v62 = vmul.f32 %v594_v52, %v559_v51  ;;  %v577_v8 = vmul.f32 %v575_v2, %v559_v51  ;;  %v1182_v43 = vld [vmem:[%s1805_s6 + $0x1] ss:$0 sm:$0xff] }
  0xe2   : > { %v661_v38 = vand.u32 15, %v656_v36 }
  0xe3   : > { %v617_v63 = vadd.f32 %v615_v55, %v610_v48  ;;  %v598_v9 = vadd.f32 %v596_v62, %v591_v0  ;;  %v579_v14 = vadd.f32 %v577_v8, %v572_v10  ;;  %v1181_v48 = vld [vmem:[#allocation11 + $0x2] ss:$0 sm:$0xff]  ;;  %v1185_v10 = vld [vmem:[#allocation11 + $0x6] ss:$0 sm:$0xff] }
  0xe4   : > { %vm1718_vm6 = vcmp.gt.s32.totalorder %v661_v38, 0  ;;  %vm1727_vm7 = vcmp.lt.s32.totalorder %v661_v38, 15 }
  0xe5   : > { %639 = vmatpush.msra.mxu3 %v617_v63 }
  0xe7   : > { %640 = vmatpush.msra.mxu3 %v616_v4 }
  0xe9   : > { %641 = vmatpush.msra.mxu3 %v598_v9 }
  0xeb   : > { %642 = vmatpush.msra.mxu3 %v597_v11 }
  0xed   : > { %643 = vmatpush.msra.mxu3 %v579_v14 }
  0xef   : > { %644 = vmatpush.msra.mxu3 %v578_v15 }
  0xf0   : > { %1045 = vmatmul.msk.f32.vlgmr.msra.gmra.mxu3 %vm622_vm1, %v618_v16 }
  0xf8   : > { %1046 = vmatmul.msk.f32.gmra.mxu3 %vm622_vm1, %v619_v17  ;;  %v1179_v17 = vld [vmem:[#allocation11 + $0x8] ss:$0 sm:$0xff] }
 0x173   : > { %v646_v19 = vpop.f32.mrf.mxu3 }
 0x174   : > { %v1698_v20 = vadd.f32 %v1175_v18, %v646_v19 }
 0x176   : > { %715 = vrot.lane.b32.xlu2 %v1698_v20, %s1484_s13  ;;  %v678_v25 = vrot.slane %v1698_v20, 7  ;;  %v746_v29 = vrot.slane %v1698_v20, 1  ;;  %v730_v21 = vmul.f32 %v1184_v61, %v1698_v20 }
 0x17b   : > { %v649_v23 = vpop.f32.mrf.mxu3 }
 0x17c   : > { %v650_v24 = vadd.f32 %v1175_v18, %v649_v23  ;;  %v1177_v23 = vld [vmem:[#allocation11 + $0x9] ss:$0 sm:$0xff] }
 0x17e   : > { %717 = vrot.lane.b32.xlu2 %v650_v24, %s1484_s13  ;;  %v679_v26 = vrot.slane %v650_v24, 7  ;;  %v747_v28 = vrot.slane %v650_v24, 1  ;;  %v731_v0 = vmul.f32 %v1184_v61, %v650_v24 }
 0x180   : > { %v681_v27 = vsel %vm680_vm2, %v678_v25, %v679_v26  ;;  %v1706_v30 = vsel %vm748_vm3, %v746_v29, %v747_v28  ;;  %v682_v31 = vsel %vm680_vm2, %v679_v26, %v678_v25  ;;  %v750_v34 = vsel %vm748_vm3, %v747_v28, %v746_v29 }
 0x181   : > { %705 = vrot.lane.b32.xlu1 %v681_v27, %s1485_s19  ;;  %687 = vrot.lane.b32.xlu0 %v681_v27, %s1484_s13  ;;  %v683_v33 = vsel %vm669_vm4, %v682_v31, 0.0  ;;  %v1711_v35 = vsel %vm672_vm5, %v750_v34, 0.0  ;;  %v700_v51 = vmul.f32 %v1176_v40, %v681_v27  ;;  %v768_v31 = vmul.f32 %v1177_v23, %v1706_v30 }
 0x182   : > { %v699_v3 = vmul.f32 %v1176_v40, %v683_v33 }
 0x186   : > { %753 = vrot.lane.b32.xlu2 %v1706_v30, %s1484_s13 }
 0x189   : > { %703 = vrot.lane.b32.xlu1 %v683_v33, %s1485_s19  ;;  %685 = vrot.lane.b32.xlu0 %v683_v33, %s1484_s13 }
 0x18e   : > { %774 = vrot.lane.b32.xlu2 %v1711_v35, %s1485_s19 }
 0x191   : > { %736 = vrot.lane.b32.xlu1 %v650_v24, %s1485_s19  ;;  %734 = vrot.lane.b32.xlu0 %v1698_v20, %s1485_s19 }
 0x199   : > { %772 = vrot.lane.b32.xlu1 %v1706_v30, %s1485_s19  ;;  %755 = vrot.lane.b32.xlu0 %v1711_v35, %s1484_s13 }
 0x1d0   : > { %v716_v37 = vpop.permute.xlu2 %715 }
 0x1d1   : > { %v719_v6 = vsel %vm1718_vm6, %v716_v37, 0.0 }
 0x1d2   : > { %v724_v11 = vmul.f32 %v1178_v54, %v719_v6 }
 0x1d8   : > { %v718_v46 = vpop.permute.xlu2 %717 }
 0x1d9   : > { %v720_v53 = vsel %vm1718_vm6, %v718_v46, 0.0 }
 0x1da   : > { %v725_v57 = vmul.f32 %v1178_v54, %v720_v53 }
 0x1e0   : > { %v754_v7 = vpop.permute.xlu2 %753 }
 0x1e1   : > { %v757_v22 = vsel %vm1718_vm6, %v754_v7, 0.0 }
 0x1e2   : > { %v762_v27 = vmul.f32 %v1179_v17, %v757_v22 }
 0x1e8   : > { %v775_v29 = vpop.permute.xlu2 %774 }
 0x1f3   : > { %v706_v42 = vpop.permute.xlu1 %705  ;;  %v688_v44 = vpop.permute.xlu0 %687 }
 0x1f4   : > { %v690_v45 = vsel %vm1718_vm6, %v688_v44, 0.0  ;;  %v708_v50 = vsel %vm1727_vm7, %v706_v42, 0.0  ;;  %v777_v42 = vsel %vm1727_vm7, %v775_v29, 0.0 }
 0x1f5   : > { %v694_v49 = vmul.f32 %v1183_v39, %v690_v45  ;;  %v712_v55 = vmul.f32 %v1181_v48, %v708_v50  ;;  %v781_v45 = vmul.f32 %v1180_v32, %v777_v42 }
 0x1f7   : > { %v696_v52 = vadd.f32 %v1182_v43, %v694_v49 }
 0x1f9   : > { %v702_v56 = vadd.f32 %v700_v51, %v696_v52 }
 0x1fb   : > { %v714_v58 = vadd.f32 %v712_v55, %v702_v56  ;;  %v704_v59 = vpop.permute.xlu1 %703  ;;  %v686_v60 = vpop.permute.xlu0 %685 }
 0x1fc   : > { %v689_v62 = vsel %vm1718_vm6, %v686_v60, 0.0  ;;  %v707_v2 = vsel %vm1727_vm7, %v704_v59, 0.0 }
 0x1fd   : > { %v693_v63 = vmul.f32 %v1183_v39, %v689_v62  ;;  %v727_v1 = vadd.f32 %v725_v57, %v714_v58  ;;  %v711_v8 = vmul.f32 %v1181_v48, %v707_v2 }
 0x1ff   : > { %v695_v4 = vadd.f32 %v1182_v43, %v693_v63  ;;  %v733_v5 = vadd.f32 %v731_v0, %v727_v1  ;;  %v769_v43 = vmul.f32 %v1177_v23, %v1711_v35  ;;  %v822_v0 = vld [vmem:[%s395_s14] sm:$0xff] }
 0x201   : > { %v701_v9 = vadd.f32 %v699_v3, %v695_v4 }
 0x203   : > { %v713_v12 = vadd.f32 %v711_v8, %v701_v9  ;;  %v737_v13 = vpop.permute.xlu1 %736  ;;  %v735_v14 = vpop.permute.xlu0 %734  ;;  %v823_v8 = vld [vmem:[%s395_s14 + $0x8] sm:$0xff] }
 0x204   : > { %v739_v15 = vsel %vm1727_vm7, %v737_v13, 0.0  ;;  %v738_v16 = vsel %vm1727_vm7, %v735_v14, 0.0 }
 0x205   : > { %v743_v18 = vmul.f32 %v1185_v10, %v739_v15  ;;  %v726_v19 = vadd.f32 %v724_v11, %v713_v12  ;;  %v742_v26 = vmul.f32 %v1185_v10, %v738_v16 }
 0x207   : > { %v745_v24 = vadd.f32 %v743_v18, %v733_v5  ;;  %v732_v25 = vadd.f32 %v730_v21, %v726_v19 }
 0x209   : > { %v744_v28 = vadd.f32 %v742_v26, %v732_v25 }
 0x20b   : > { %v764_v33 = vadd.f32 %v762_v27, %v744_v28  ;;  %v773_v34 = vpop.permute.xlu1 %772  ;;  %v756_v36 = vpop.permute.xlu0 %755 }
 0x20c   : > { %v776_v37 = vsel %vm1727_vm7, %v773_v34, 0.0  ;;  %v758_v20 = vsel %vm1718_vm6, %v756_v36, 0.0 }
 0x20d   : > { %v770_v38 = vadd.f32 %v768_v31, %v764_v33  ;;  %v780_v39 = vmul.f32 %v1180_v32, %v776_v37  ;;  %v763_v40 = vmul.f32 %v1179_v17, %v758_v20 }
 0x20f   : > { %v782_v44 = vadd.f32 %v780_v39, %v770_v38  ;;  %v765_v30 = vadd.f32 %v763_v40, %v745_v24 }
 0x211   : > { %v1047_v46 = vmul.f32 -1.442695, %v782_v44  ;;  %v771_v48 = vadd.f32 %v769_v43, %v765_v30 }
 0x213   : > { %1186 = vpow2.f32 %v1047_v46  ;;  %v783_v49 = vadd.f32 %v781_v45, %v771_v48 }
 0x215   : > { %v1048_v50 = vmul.f32 -1.442695, %v783_v49 }
 0x217   : > { %1188 = vpow2.f32 %v1048_v50 }
 0x219   : > { %v1187_v41 = vpop.eup %1186 }
 0x21a   : > { %v790_v51 = vadd.f32 1.0, %v1187_v41 }
 0x21c   : > { %1190 = vrcp.f32 %v790_v51  ;;  %v801_v56 = vand.u32 2147483647, %v790_v51  ;;  %v803_v57 = vand.u32 2147483648, %v790_v51  ;;  %vm797_vm9 = vweird.f32 %v790_v51 }
 0x21d   : > { %v1189_v52 = vpop.eup %1188 }
 0x21e   : > { %v791_v53 = vadd.f32 1.0, %v1189_v52  ;;  %vm802_vm11 = vcmp.eq.f32.partialorder %v801_v56, 8.507059e+37  ;;  %v804_v62 = vor.u32 1.1754944e-38, %v803_v57 }
 0x220   : > { %1192 = vrcp.f32 %v791_v53  ;;  %v818_v63 = vand.u32 2147483648, %v791_v53  ;;  %v816_v3 = vand.u32 2147483647, %v791_v53  ;;  %vm812_vm13 = vweird.f32 %v791_v53 }
 0x222   : > { %v1191_v47 = vpop.eup %1190  ;;  %v819_v7 = vor.u32 1.1754944e-38, %v818_v63  ;;  %vm817_vm15 = vcmp.eq.f32.partialorder %v816_v3, 8.507059e+37 }
 0x223   : > { %v793_v54 = vmul.f32 %v1191_v47, %v790_v51  ;;  %vm798_vm8 = vweird.f32 %v1191_v47 }
 0x224   : > { %vm799_vm10 = vmor %vm797_vm9, %vm798_vm8 }
 0x225   : > { %v794_v35 = vsub.f32 1.0, %v793_v54 }
 0x226   : > { %v1193_v55 = vpop.eup %1192 }
 0x227   : > { %v795_v58 = vmul.f32 %v1191_v47, %v794_v35  ;;  %v808_v59 = vmul.f32 %v1193_v55, %v791_v53  ;;  %vm813_vm12 = vweird.f32 %v1193_v55 }
 0x228   : > { %vm814_vm14 = vmor %vm812_vm13, %vm813_vm12 }
 0x229   : > { %v796_v60 = vadd.f32 %v1191_v47, %v795_v58  ;;  %v809_v61 = vsub.f32 1.0, %v808_v59 }
 0x22b   : > { %v800_v1 = vsel %vm799_vm10, %v1191_v47, %v796_v60  ;;  %v810_v2 = vmul.f32 %v1193_v55, %v809_v61 }
 0x22c   : > { %v805_v4 = vsel %vm802_vm11, %v804_v62, %v800_v1 }
 0x22d   : > { %v811_v5 = vadd.f32 %v1193_v55, %v810_v2  ;;  %v824_v6 = vmul.f32 %v822_v0, %v805_v4 }
 0x22f   : > { %v815_v9 = vsel %vm814_vm14, %v1193_v55, %v811_v5  ;;  %826 = vst [vmem:[%s455_s27] sm:$0xff] %v824_v6 }
 0x230   : > { %v820_v10 = vsel %vm817_vm15, %v819_v7, %v815_v9 }
 0x231   : > { %v825_v11 = vmul.f32 %v823_v8, %v820_v10 }
 0x233   : > { %827 = vst [vmem:[%s455_s27 + $0x8] sm:$0xff] %v825_v11 }
 0x234   : > { %1401 = shalt.err (!%p1398_p0)
}
 0x235   : > { %s1486_s4 = smov 128   ;;  %s1487_s30 = smov 8  }
 0x236   : > { %1077 = dma.vmem_to_hbm [thread:$0]  (%p1631_p7), %s844_s21, 256, %s846_s15, %s829_s2, %s1486_s4, %s1486_s4, %s1487_s30  }
 0x237 PF: > { %s860_s9 = sand.u32 1, %s1452_s24   ;;  %p1100_p3 = pnand %p1024_p11, %p1573_p6 }
 0x238   : > { %s861_s13 = scalar_lea.sflag [#allocation4], %s860_s9 }
 0x239   : > { %p1101_p5 = pneg %p1100_p3 }
 0x23b   : > { %1447 = dma.done.wait (%p1101_p5), %s861_s13, 256  }
 0x23c   : > { %1449 = vsyncadd (%p1101_p5), %s861_s13, 4294967040  ;;  %s28_s29 = sadd.s32 1, %s1472_s29   ;;  %s1838_s19 = sld [smem:[#allocation20_spill]] }
 0x23d   : > { %p25_p9 = scmp.ge.s32.totalorder %s28_s29, 4   ;;  %s1839_s26 = sld [smem:[#allocation23_spill]] }
 0x23e   : > { %s1840_s27 = sld [smem:[#allocation21_spill]]  ;;  %s1842_s24 = smov %s1456_s25 }
 0x23f   : > { %s1841_s28 = sld [smem:[#allocation22_spill]]  ;;  %27 = sbr.rel (!%p25_p9) target bundleno = 15 (0xf), region = 137 }
 0x242   : > { %s1843_s25 = smov %s1838_s19 }
 0x244   :  { %867 = vsyncpa [#allocation3], 1 }
 0x245   :  { %869 = vsyncpa [#allocation3 + $0x1], 1 }
 0x246   :  { %870 = vsyncpa [#allocation6], 1 }
 0x247   :  { %872 = vsyncpa [#allocation6 + $0x1], 1 }
 0x248   :  { %873 = vsyncpa [#allocation9], 1 }
 0x249   :  { %874 = vsyncpa [#allocation12], 1 }
 0x24a   :  { %875 = vsyncpa [#allocation4], 1 }
 0x24b   :  { %877 = vsyncpa [#allocation4 + $0x1], 1 }

</bundles_post_ra>
